<compile_context>
chip_gen: v7x
topology: tpu7x:2x2x1
jax: 0.10.0
libtpu: 0.0.40
codegen_flags: <defaults>
</compile_context>

<pallas_src>
import functools

import jax
import jax.numpy as jnp
from jax.experimental import pallas as pl
from jax.experimental.pallas import tpu as pltpu

_LANES = 128


def _round_up(x, m):
    return ((x + m - 1) // m) * m


def _mse_kernel(z1_ref, z2_ref, o_ref, *, inv_count):
    step = pl.program_id(0)

    @pl.when(step == 0)
    def _():
        o_ref[...] = jnp.zeros_like(o_ref)

    d = z1_ref[...].astype(jnp.float32) - z2_ref[...].astype(jnp.float32)
    o_ref[...] += jnp.sum(d * d)

    @pl.when(step == pl.num_programs(0) - 1)
    def _():
        o_ref[...] = o_ref[...] * jnp.float32(inv_count)


def enc_loss(z1, z2, *, max_rows_per_tile=1024):
    """nn.MSELoss() (default 'mean' reduction) between z1 and z2 via Pallas."""
    assert z1.shape == z2.shape, (z1.shape, z2.shape)
    total = int(z1.size)

    # Flatten and view as (M, 128) with 128 on the lane axis (no transposes).
    m_raw = _round_up(-(-total // _LANES), 8)      # rows, sublane-aligned
    tm = min(max_rows_per_tile, m_raw)             # rows per grid step
    m = _round_up(m_raw, tm)                       # rows, tile-aligned
    padded = m * _LANES

    a = z1.reshape(-1)
    b = z2.reshape(-1)
    if padded != total:
        # Zero padding on BOTH operands -> (a - b) = 0 there -> exact result.
        a = jnp.pad(a, (0, padded - total))
        b = jnp.pad(b, (0, padded - total))
    a = a.reshape(m, _LANES)
    b = b.reshape(m, _LANES)

    grid = (m // tm,)
    kernel = functools.partial(_mse_kernel, inv_count=1.0 / total)
    out = pl.pallas_call(
        kernel,
        out_shape=jax.ShapeDtypeStruct((1, 1), jnp.float32),
        grid=grid,
        in_specs=[
            pl.BlockSpec((tm, _LANES), lambda i: (i, 0)),
            pl.BlockSpec((tm, _LANES), lambda i: (i, 0)),
        ],
        out_specs=pl.BlockSpec((1, 1), lambda i: (0, 0)),
        compiler_params=pltpu.CompilerParams(
            dimension_semantics=("arbitrary",),
            vmem_limit_bytes=32 * 1024 * 1024,
        ),
    )(a, b)
    return out[0, 0]


if __name__ == "__main__":
    key = jax.random.PRNGKey(0)
    k1, k2, k3, k4 = jax.random.split(key, 4)

    # Small shapes consistent with the module's use in GANomaly:
    # z1, z2 are latent codes of shape (batch, 128 * in_channels, latent_len)
    # with batch=2, in_channels=2.
    z1 = jax.random.normal(k1, (2, 256, 4), jnp.float32)
    z2 = jax.random.normal(k2, (2, 256, 4), jnp.float32)

    loss = jax.jit(enc_loss)(z1, z2)
    jax.block_until_ready(loss)

    ref = jnp.mean((z1 - z2) ** 2)
    assert jnp.allclose(loss, ref, rtol=1e-6, atol=1e-6), (loss, ref)

    # Second check: non-tile-aligned shape forcing grid > 1 plus tail padding.
    z1b = jax.random.normal(k3, (8, 256, 40), jnp.float32)
    z2b = jax.random.normal(k4, (8, 256, 40), jnp.float32)
    loss_b = jax.jit(
        functools.partial(enc_loss, max_rows_per_tile=256))(z1b, z2b)
    jax.block_until_ready(loss_b)
    ref_b = jnp.mean((z1b - z2b) ** 2)
    assert jnp.allclose(loss_b, ref_b, rtol=1e-5, atol=1e-6), (loss_b, ref_b)

    print("KERNEL_OK")
</pallas_src>

<mosaic_0001>
module attributes {stable_mosaic.version = 11 : i64} {
  func.func @_mse_kernel(%arg0: i32, %arg1: memref<16x128xf32, #tpu.memory_space<vmem>>, %arg2: memref<16x128xf32, #tpu.memory_space<vmem>>, %arg3: memref<1x1xf32, #tpu.memory_space<vmem>>) attributes {dimension_semantics = [#tpu.dimension_semantics<arbitrary>], iteration_bounds = array<i64: 1>, scalar_prefetch = 0 : i64, scratch_operands = 0 : i64, tpu.core_type = #tpu.core_type<tc>, window_params = [{transform_indices = @transform_0, window_bounds = array<i64: 16, 128>}, {transform_indices = @transform_1, window_bounds = array<i64: 16, 128>}, {pipeline_mode = #tpu.pipeline_mode<synchronous>, transform_indices = @transform_2, window_bounds = array<i64: 1, 1>}]} {
    %c0_i32 = arith.constant 0 : i32
    %0 = arith.cmpi eq, %arg0, %c0_i32 : i32
    %1 = arith.extui %0 : i1 to i32
    %c0_i32_0 = arith.constant 0 : i32
    %2 = arith.cmpi ne, %1, %c0_i32_0 : i32
    scf.if %2 {
      %cst_10 = arith.constant 0.000000e+00 : f32
      %18 = vector.broadcast %cst_10 : f32 to vector<1x1xf32>
      %c0_11 = arith.constant 0 : index
      %c0_12 = arith.constant 0 : index
      %19 = vector.load %arg3[%c0_11, %c0_12] : memref<1x1xf32, #tpu.memory_space<vmem>>, vector<1x1xf32>
      tpu.vector_store %arg3[%c0_11, %c0_12], %18 {strides = array<i32>} : memref<1x1xf32, #tpu.memory_space<vmem>>, vector<1x1xf32>,
    } else {
    }
    %c0 = arith.constant 0 : index
    %c0_1 = arith.constant 0 : index
    %3 = vector.load %arg1[%c0, %c0_1] : memref<16x128xf32, #tpu.memory_space<vmem>>, vector<16x128xf32>
    %c0_2 = arith.constant 0 : index
    %c0_3 = arith.constant 0 : index
    %4 = vector.load %arg2[%c0_2, %c0_3] : memref<16x128xf32, #tpu.memory_space<vmem>>, vector<16x128xf32>
    %5 = arith.subf %3, %4 : vector<16x128xf32>
    %c0_4 = arith.constant 0 : index
    %c0_5 = arith.constant 0 : index
    %6 = vector.load %arg3[%c0_4, %c0_5] : memref<1x1xf32, #tpu.memory_space<vmem>>, vector<1x1xf32>
    %7 = arith.mulf %5, %5 : vector<16x128xf32>
    %8 = vector.shape_cast %7 : vector<16x128xf32> to vector<1x16x128xf32>
    %cst = arith.constant dense<0.000000e+00> : vector<1xf32>
    %9 = vector.multi_reduction <add>, %8, %cst [1, 2] : vector<1x16x128xf32> to vector<1xf32>
    %10 = vector.shape_cast %9 : vector<1xf32> to vector<1x1x1xf32>
    %11 = vector.extract %10[0, 0, 0] : f32 from vector<1x1x1xf32>
    %12 = vector.broadcast %11 : f32 to vector<1x1xf32>
    %13 = arith.addf %6, %12 : vector<1x1xf32>
    %c0_6 = arith.constant 0 : index
    %c0_7 = arith.constant 0 : index
    %14 = vector.load %arg3[%c0_6, %c0_7] : memref<1x1xf32, #tpu.memory_space<vmem>>, vector<1x1xf32>
    tpu.vector_store %arg3[%c0_6, %c0_7], %13 {strides = array<i32>} : memref<1x1xf32, #tpu.memory_space<vmem>>, vector<1x1xf32>,
    %c0_i32_8 = arith.constant 0 : i32
    %15 = arith.cmpi eq, %arg0, %c0_i32_8 : i32
    %16 = arith.extui %15 : i1 to i32
    %c0_i32_9 = arith.constant 0 : i32
    %17 = arith.cmpi ne, %16, %c0_i32_9 : i32
    scf.if %17 {
      %c0_10 = arith.constant 0 : index
      %c0_11 = arith.constant 0 : index
      %18 = vector.load %arg3[%c0_10, %c0_11] : memref<1x1xf32, #tpu.memory_space<vmem>>, vector<1x1xf32>
      %cst_12 = arith.constant 4.8828125E-4 : f32
      %19 = vector.broadcast %cst_12 : f32 to vector<1x1xf32>
      %20 = arith.mulf %18, %19 : vector<1x1xf32>
      %c0_13 = arith.constant 0 : index
      %c0_14 = arith.constant 0 : index
      %21 = vector.load %arg3[%c0_13, %c0_14] : memref<1x1xf32, #tpu.memory_space<vmem>>, vector<1x1xf32>
      tpu.vector_store %arg3[%c0_13, %c0_14], %20 {strides = array<i32>} : memref<1x1xf32, #tpu.memory_space<vmem>>, vector<1x1xf32>,
    } else {
    }
    return
  }
  func.func @transform_0(%arg0: i32) -> (i32, i32) {
    %c0_i32 = arith.constant 0 : i32
    %c0_i32_0 = arith.constant 0 : i32
    return %arg0, %c0_i32 : i32, i32
  }
  func.func @transform_1(%arg0: i32) -> (i32, i32) {
    %c0_i32 = arith.constant 0 : i32
    %c0_i32_0 = arith.constant 0 : i32
    return %arg0, %c0_i32 : i32, i32
  }
  func.func @transform_2(%arg0: i32) -> (i32, i32) {
    %c0_i32 = arith.constant 0 : i32
    %c0_i32_0 = arith.constant 0 : i32
    %c0_i32_1 = arith.constant 0 : i32
    return %c0_i32, %c0_i32_0 : i32, i32
  }
}

</mosaic_0001>

<bundles_post_ra>
// kernel: enc_loss.1
= control target key start
LH: loop header
LB: loop body
LE: loop exit
PB: predicated region body
PF: predicated region fallthrough
CT: control target
= control target key end

     0   :  { %s133_s0 = inlined_call_operand.vmem [shape: f32[16,128], index: 0, kind: input, shape index: {}]   ;;  %s134_s1 = inlined_call_operand.vmem [shape: f32[16,128], index: 1, kind: input, shape index: {}]   ;;  %s135_s2 = inlined_call_operand.hbm [shape: f32[1,1], index: 2, kind: output, shape index: {}]  }
   0x1   :  { %v18_v0 = vld [vmem:[%s133_s0] sm:$0xff]  ;;  %v19_v1 = vld [vmem:[%s133_s0 + $0x8] sm:$0xff] }
   0x2   :  { %v20_v2 = vld [vmem:[%s134_s1] sm:$0xff]  ;;  %v21_v3 = vld [vmem:[%s134_s1 + $0x8] sm:$0xff] }
   0x3   :  { %v22_v4 = vsub.f32 %v18_v0, %v20_v2 }
   0x4   :  { %7 = vsyncpa [#allocation3], 0  ;;  %v23_v5 = vsub.f32 %v19_v1, %v21_v3  ;;  %vm16_vm0 = vcmask 0   ;;  %v89_v9 = vmov 0.0   ;;  %s90_s1 = smov [#allocation2]  }
   0x5   :  { %v25_v6 = vmul.f32 %v22_v4, %v22_v4  ;;  %17 = vst.msk [vmem:[#allocation2] sm:$0x1] %vm16_vm0, %v89_v9  ;;  %s53_s17 = sshll.u32 %s90_s1, 4  ;;  %s54_s17 = int_to_ptr.vmem [resolvable:$true] %s53_s17 }
   0x6   :  { %v26_v7 = vmul.f32 %v23_v5, %v23_v5  ;;  %s65_s18 = scalar_lea.vmem %s54_s17, 16  ;;  %s69_s19 = scalar_lea.vmem %s54_s17, 32 }
   0x7   :  { %p66_p0 = scmp.ne.s32.totalorder %s54_s17, %s65_s18  ;;  %p70_p1 = scmp.lt.s32.totalorder %s54_s17, %s54_s17 }
   0x8   :  { %v27_v8 = vadd.f32 %v26_v7, %v25_v6  ;;  %p71_p2 = scmp.lt.s32.totalorder %s69_s19, %s65_s18 }
   0xa   :  { %28 = vadd.xlane.f32.xlu0 %v27_v8  ;;  %p72_p3 = por %p71_p2, %p70_p1 }
   0xc   :  { %v24_v17 = vld [vmem:[#allocation2] sm:$0x1]  ;;  %p73_p4 = pnand %p72_p3, %p66_p0 }
  0x97   :  { %v29_v10 = vpop.xlane.xlu0 %28 }
  0x98   :  { %v30_v11 = vrot.slane %v29_v10, 4 }
  0x9a   :  { %v31_v12 = vadd.f32 %v30_v11, %v29_v10 }
  0x9c   :  { %v32_v13 = vrot.slane %v31_v12, 2 }
  0x9e   :  { %v33_v14 = vadd.f32 %v32_v13, %v31_v12 }
  0xa0   :  { %v34_v15 = vrot.slane %v33_v14, 1 }
  0xa2   :  { %v35_v16 = vadd.f32 %v34_v15, %v33_v14 }
  0xa4   :  { %61 = vpush %v35_v16 }
  0xd5   :  { %s62_s0 = spop %61 }
  0xd6   :  { %v37_v18 = vstv %s62_s0 }
  0xd7   :  { %v38_v19 = vadd.f32 %v37_v18, %v24_v17 }
  0xd9   :  { %40 = vst.msk [vmem:[#allocation2] sm:$0x1] %vm16_vm0, %v38_v19 }
  0xe0   :  { %v44_v20 = vld [vmem:[#allocation2] sm:$0x1] }
  0xe1   :  { %v45_v21 = vmul.f32 0.00048828125, %v44_v20 }
  0xe3   :  { %46 = vst.msk [vmem:[#allocation2] sm:$0x1] %vm16_vm0, %v45_v21 }
  0xe4   :  { %76 = shalt.err (!%p73_p4)
}
  0xe5   :  { %s77_s22 = scalar_lea.hbm %s135_s2, 16 }
  0xe6   :  { %p78_p5 = scmp.ne.s32.totalorder %s135_s2, %s77_s22  ;;  %p81_p6 = scmp.lt.u32.totalorder %s77_s22, %s135_s2 }
  0xe8   :  { %p83_p7 = pnand %p81_p6, %p78_p5 }
  0xea   :  { %86 = shalt.err (!%p83_p7)
}
  0xeb   :  { %56 = dma.vmem_to_hbm [thread:$0]  %s54_s17, 16, %s135_s2, [#allocation3]  }
  0xec   :  { %87 = dma.done.wait [#allocation3], 16  }
  0xed   :  { %88 = vsyncadd [#allocation3], 4294967280 }
  0xee   :  { %60 = vsyncpa [#allocation3], 1 }

</bundles_post_ra>
